<compile_context>
chip_gen: v6e
topology: v6e:2x2x1
jax: 0.10.0
libtpu: 0.0.40
codegen_flags: <defaults>
</compile_context>

<pallas_src>
import functools

import jax
import jax.numpy as jnp
from jax import lax
from jax.experimental import pallas as pl
from jax.experimental.pallas import tpu as pltpu


def _round_up(x, m):
    return ((x + m - 1) // m) * m


def _cdiv(a, b):
    return (a + b - 1) // b


def _modulating(one_minus_pt, gamma):
    """(1 - pt) ** gamma with cheap paths for integer gamma."""
    if gamma == 2.0:
        return one_minus_pt * one_minus_pt          # VPU only
    if float(gamma).is_integer():
        return lax.integer_pow(one_minus_pt, int(gamma))
    return one_minus_pt ** gamma                    # general float gamma


def _irst_stats_kernel(p_ref, t_ref, out_ref, *, alpha, gamma, binary_target,
                       hw, hw_tile, mask_cols):
    """One (B, hw_tile) chunk of planes; accumulates packed stats into out_ref.

    out_ref block is (B, 4): [:,0]=inter, [:,1]=pred_sum, [:,2]=tgt_sum,
    [:,3]=focal_sum.  The HW grid axis (axis 1) is the reduction axis.
    """
    k = pl.program_id(1)

    p = p_ref[...].astype(jnp.float32)
    t = t_ref[...].astype(jnp.float32)

    if mask_cols:
        # Ragged last HW chunk: zero out-of-range columns so they contribute
        # exactly nothing (p=0, t=0 -> inter = psum = tsum = focal = 0).
        col = lax.broadcasted_iota(jnp.int32, p.shape, 1) + k * hw_tile
        valid = col < hw
        p = jnp.where(valid, p, 0.0)
        t = jnp.where(valid, t, 0.0)

    # --- per-plane linear statistics (lane reductions -> XLU) ---
    inter = jnp.sum(p * t, axis=1, keepdims=True)
    psum = jnp.sum(p, axis=1, keepdims=True)
    tsum = jnp.sum(t, axis=1, keepdims=True)

    # --- focal loss contribution ---
    if binary_target:
        # Hard {0,1} target: BCE collapses to a single log per element.
        # exp(-bce) == max(pt_prob, exp(-100)); exp(-100) underflows f32,
        # so pt_prob is numerically identical to the reference's exp(-bce).
        pt = jnp.where(t > 0.5, p, 1.0 - p)
        logc = jnp.maximum(jnp.log(pt), -100.0)       # == -bce
        mod = _modulating(1.0 - pt, gamma)
        fsum = -jnp.sum(mod * logc, axis=1, keepdims=True)   # sign folded here
    else:
        # General (soft-target) path, matches torch.binary_cross_entropy
        # (log clamp at -100).
        log_p = jnp.maximum(jnp.log(p), -100.0)
        log_1mp = jnp.maximum(jnp.log(1.0 - p), -100.0)
        bce = -(t * log_p + (1.0 - t) * log_1mp)
        pt = jnp.exp(-bce)
        mod = _modulating(1.0 - pt, gamma)
        fsum = jnp.sum(mod * bce, axis=1, keepdims=True)

    if alpha != 1.0:
        fsum = alpha * fsum

    # Packed accumulator resident in VMEM across the HW (reduction) axis.
    @pl.when(k == 0)
    def _():
        out_ref[...] = jnp.zeros_like(out_ref)

    out_ref[:, 0:1] = out_ref[:, 0:1] + inter
    out_ref[:, 1:2] = out_ref[:, 1:2] + psum
    out_ref[:, 2:3] = out_ref[:, 2:3] + tsum
    out_ref[:, 3:4] = out_ref[:, 3:4] + fsum


def irst_loss(pred, target, *, dice_weight=1.0, focal_weight=1.0,
              iou_weight=0.5, focal_alpha=1.0, focal_gamma=2.0,
              smooth=1e-5, binary_target=False, max_hw_tile=None):
    """pred, target: (N, C, H, W); pred must be probabilities in (0, 1).

    binary_target=True selects the single-transcendental fast path and is only
    valid when target is a hard {0,1} mask.
    max_hw_tile optionally caps the HW chunk size (mainly for testing).
    """
    N, C, H, W = pred.shape
    NC, HW = N * C, H * W

    # Lane-dense 2-D view (no copy); keep HBM dtype, cast to f32 in-kernel.
    p2 = pred.reshape(NC, HW)
    t2 = target.reshape(NC, HW)
    in_itemsize = p2.dtype.itemsize + t2.dtype.itemsize   # both inputs, per elem

    # --- per-generation VMEM budgeting -------------------------------------
    try:
        info = pltpu.get_tpu_info()
        vmem_cap = int(getattr(info, "vmem_capacity_bytes", 64 * 1024 * 1024))
    except Exception:
        vmem_cap = 64 * 1024 * 1024                      # conservative (v7x)
    # Explicit scoped limit, with headroom below physical capacity.
    vmem_limit = min(vmem_cap * 3 // 4, 96 * 1024 * 1024)
    # VMEM bytes per live block element:
    #   2x pipeline buffers for both inputs (HBM dtype) + ~6 f32 temporaries
    #   (p/t upcasts, bce, pt, mod, focal) that cannot all live in vregs.
    per_elem = 2 * in_itemsize + 6 * 4
    budget_elems = max(8 * 128, (vmem_limit * 3 // 5) // per_elem)

    # --- HW (reduction) axis tile -------------------------------------------
    if max_hw_tile is not None and max_hw_tile < HW:
        hw_tile = max(128, (int(max_hw_tile) // 128) * 128)
    elif HW * 8 <= budget_elems:
        hw_tile = HW                                     # whole row per step
    else:
        hw_tile = max(128, min(32768, ((budget_elems // 8) // 128) * 128))
    if hw_tile >= HW:
        hw_tile = HW
    hw_chunks = _cdiv(HW, hw_tile)
    mask_cols = (HW % hw_tile) != 0

    # --- plane block size ----------------------------------------------------
    if NC <= 8:
        b = NC                                           # block == full dim
    else:
        b = max(8, ((budget_elems // hw_tile) // 8) * 8)
        b = min(b, _round_up(NC, 8))
        # v7x megacore: keep >= 2 plane-grid steps so the "parallel" axis can
        # be sharded across both TensorCores.
        b = min(b, max(8, _round_up(_cdiv(NC, 2), 8)))
    plane_blocks = _cdiv(NC, b)
    ncp = plane_blocks * b      # output rows (garbage rows >= NC sliced off)

    kernel = functools.partial(
        _irst_stats_kernel,
        alpha=float(focal_alpha), gamma=float(focal_gamma),
        binary_target=bool(binary_target),
        hw=HW, hw_tile=hw_tile, mask_cols=mask_cols)

    trans_per_elem = 1 if binary_target else 3
    cost = pl.CostEstimate(
        flops=14 * NC * HW,
        transcendentals=trans_per_elem * NC * HW,
        bytes_accessed=NC * HW * in_itemsize + ncp * 4 * 4,
    )

    stats = pl.pallas_call(
        kernel,
        out_shape=jax.ShapeDtypeStruct((ncp, 4), jnp.float32),
        grid_spec=pltpu.PrefetchScalarGridSpec(
            num_scalar_prefetch=0,
            grid=(plane_blocks, hw_chunks),
            in_specs=[
                pl.BlockSpec((b, hw_tile), lambda i, k: (i, k)),
                pl.BlockSpec((b, hw_tile), lambda i, k: (i, k)),
            ],
            out_specs=pl.BlockSpec((b, 4), lambda i, k: (i, 0)),
        ),
        compiler_params=pltpu.CompilerParams(
            dimension_semantics=("parallel", "arbitrary"),
            vmem_limit_bytes=int(vmem_limit)),
        cost_estimate=cost,
    )(p2, t2)

    # --- tiny scalar combination in plain JAX --------------------------------
    stats = stats[:NC]
    inter = stats[:, 0]
    p_sum = stats[:, 1]
    t_sum = stats[:, 2]
    f_sum = stats[:, 3]

    dice = (2.0 * inter + smooth) / (p_sum + t_sum + smooth)
    iou = (inter + smooth) / (p_sum + t_sum - inter + smooth)
    dice_loss = 1.0 - jnp.mean(dice)
    iou_loss = 1.0 - jnp.mean(iou)
    focal_loss = jnp.sum(f_sum) / (NC * HW)
    total = (dice_weight * dice_loss + focal_weight * focal_loss
             + iou_weight * iou_loss)
    return {"dice": dice_loss, "focal": focal_loss, "iou": iou_loss,
            "total": total}


def irst_loss_ref(pred, target, *, dice_weight=1.0, focal_weight=1.0,
                  iou_weight=0.5, focal_alpha=1.0, focal_gamma=2.0,
                  smooth=1e-5):
    """Pure-JAX reference mirroring the PyTorch module."""
    pred = pred.astype(jnp.float32)
    target = target.astype(jnp.float32)
    inter = jnp.sum(pred * target, axis=(2, 3))
    p_sum = jnp.sum(pred, axis=(2, 3))
    t_sum = jnp.sum(target, axis=(2, 3))
    dice = 1.0 - jnp.mean((2.0 * inter + smooth) / (p_sum + t_sum + smooth))
    iou = 1.0 - jnp.mean((inter + smooth) /
                         (p_sum + t_sum - inter + smooth))
    bce = -(target * jnp.maximum(jnp.log(pred), -100.0)
            + (1.0 - target) * jnp.maximum(jnp.log(1.0 - pred), -100.0))
    pt = jnp.exp(-bce)
    focal = jnp.mean(focal_alpha * (1.0 - pt) ** focal_gamma * bce)
    total = dice_weight * dice + focal_weight * focal + iou_weight * iou
    return {"dice": dice, "focal": focal, "iou": iou, "total": total}


if __name__ == "__main__":
    key = jax.random.PRNGKey(0)

    # (shape, forced max_hw_tile): second case forces a small HW tile so the
    # ragged plane-block and ragged HW-chunk paths are exercised at small size.
    cases = [((2, 4, 16, 16), None),
             ((2, 5, 20, 20), 128)]

    for shape, tile in cases:
        key, k1, k2 = jax.random.split(key, 3)
        pred = jax.nn.sigmoid(jax.random.normal(k1, shape, jnp.float32))
        target = (jax.random.uniform(k2, shape) > 0.8).astype(jnp.float32)

        ref = irst_loss_ref(pred, target)
        for binary in (False, True):   # general path and binary fast path
            out = irst_loss(pred, target, binary_target=binary,
                            max_hw_tile=tile)
            out = jax.tree_util.tree_map(jax.block_until_ready, out)
            for name in ("dice", "focal", "iou", "total"):
                assert jnp.allclose(out[name], ref[name],
                                    atol=2e-5, rtol=1e-4), (
                    shape, binary, name, float(out[name]), float(ref[name]))

    print("KERNEL_OK")
</pallas_src>

<mosaic_0001>
module attributes {stable_mosaic.version = 11 : i64} {
  func.func @_irst_stats_kernel(%arg0: i32, %arg1: i32, %arg2: memref<8x256xf32, #tpu.memory_space<vmem>>, %arg3: memref<8x256xf32, #tpu.memory_space<vmem>>, %arg4: memref<8x4xf32, #tpu.memory_space<vmem>>) attributes {dimension_semantics = [#tpu.dimension_semantics<parallel>, #tpu.dimension_semantics<arbitrary>], iteration_bounds = array<i64: 1, 1>, scalar_prefetch = 0 : i64, scratch_operands = 0 : i64, tpu.core_type = #tpu.core_type<tc>, window_params = [{transform_indices = @transform_0, window_bounds = array<i64: 8, 256>}, {transform_indices = @transform_1, window_bounds = array<i64: 8, 256>}, {transform_indices = @transform_2, window_bounds = array<i64: 8, 4>}]} {
    %c0 = arith.constant 0 : index
    %c0_0 = arith.constant 0 : index
    %0 = vector.load %arg2[%c0, %c0_0] : memref<8x256xf32, #tpu.memory_space<vmem>>, vector<8x256xf32>
    %c0_1 = arith.constant 0 : index
    %c0_2 = arith.constant 0 : index
    %1 = vector.load %arg3[%c0_1, %c0_2] : memref<8x256xf32, #tpu.memory_space<vmem>>, vector<8x256xf32>
    %2 = arith.mulf %0, %1 : vector<8x256xf32>
    %cst = arith.constant dense<0.000000e+00> : vector<8xf32>
    %3 = vector.multi_reduction <add>, %2, %cst [1] : vector<8x256xf32> to vector<8xf32>
    %4 = vector.shape_cast %3 : vector<8xf32> to vector<8x1xf32>
    %cst_3 = arith.constant dense<0.000000e+00> : vector<8xf32>
    %5 = vector.multi_reduction <add>, %0, %cst_3 [1] : vector<8x256xf32> to vector<8xf32>
    %6 = vector.shape_cast %5 : vector<8xf32> to vector<8x1xf32>
    %cst_4 = arith.constant dense<0.000000e+00> : vector<8xf32>
    %7 = vector.multi_reduction <add>, %1, %cst_4 [1] : vector<8x256xf32> to vector<8xf32>
    %8 = vector.shape_cast %7 : vector<8xf32> to vector<8x1xf32>
    %9 = math.log %0 : vector<8x256xf32>
    %cst_5 = arith.constant -1.000000e+02 : f32
    %10 = vector.broadcast %cst_5 : f32 to vector<8x256xf32>
    %11 = arith.maximumf %9, %10 : vector<8x256xf32>
    %cst_6 = arith.constant 1.000000e+00 : f32
    %12 = vector.broadcast %cst_6 : f32 to vector<8x256xf32>
    %13 = arith.subf %12, %0 : vector<8x256xf32>
    %14 = math.log %13 : vector<8x256xf32>
    %cst_7 = arith.constant -1.000000e+02 : f32
    %15 = vector.broadcast %cst_7 : f32 to vector<8x256xf32>
    %16 = arith.maximumf %14, %15 : vector<8x256xf32>
    %17 = arith.mulf %1, %11 : vector<8x256xf32>
    %cst_8 = arith.constant 1.000000e+00 : f32
    %18 = vector.broadcast %cst_8 : f32 to vector<8x256xf32>
    %19 = arith.subf %18, %1 : vector<8x256xf32>
    %20 = arith.mulf %19, %16 : vector<8x256xf32>
    %21 = arith.addf %17, %20 : vector<8x256xf32>
    %cst_9 = arith.constant 0.000000e+00 : f32
    %22 = vector.broadcast %cst_9 : f32 to vector<8x256xf32>
    %23 = arith.subf %22, %21 : vector<8x256xf32>
    %cst_10 = arith.constant 0.000000e+00 : f32
    %24 = vector.broadcast %cst_10 : f32 to vector<8x256xf32>
    %25 = arith.subf %24, %23 : vector<8x256xf32>
    %26 = math.exp %25 : vector<8x256xf32>
    %cst_11 = arith.constant 1.000000e+00 : f32
    %27 = vector.broadcast %cst_11 : f32 to vector<8x256xf32>
    %28 = arith.subf %27, %26 : vector<8x256xf32>
    %29 = arith.mulf %28, %28 : vector<8x256xf32>
    %30 = arith.mulf %29, %23 : vector<8x256xf32>
    %cst_12 = arith.constant dense<0.000000e+00> : vector<8xf32>
    %31 = vector.multi_reduction <add>, %30, %cst_12 [1] : vector<8x256xf32> to vector<8xf32>
    %32 = vector.shape_cast %31 : vector<8xf32> to vector<8x1xf32>
    %c0_i32 = arith.constant 0 : i32
    %33 = arith.cmpi eq, %arg1, %c0_i32 : i32
    %34 = arith.extui %33 : i1 to i32
    %c0_i32_13 = arith.constant 0 : i32
    %35 = arith.cmpi ne, %34, %c0_i32_13 : i32
    scf.if %35 {
      %cst_27 = arith.constant 0.000000e+00 : f32
      %48 = vector.broadcast %cst_27 : f32 to vector<8x4xf32>
      %c0_28 = arith.constant 0 : index
      %c0_29 = arith.constant 0 : index
      %49 = vector.load %arg4[%c0_28, %c0_29] : memref<8x4xf32, #tpu.memory_space<vmem>>, vector<8x4xf32>
      tpu.vector_store %arg4[%c0_28, %c0_29], %48 {strides = array<i32>} : memref<8x4xf32, #tpu.memory_space<vmem>>, vector<8x4xf32>,
    } else {
    }
    %c0_14 = arith.constant 0 : index
    %c0_15 = arith.constant 0 : index
    %36 = vector.load %arg4[%c0_14, %c0_15] : memref<8x4xf32, #tpu.memory_space<vmem>>, vector<8x1xf32>
    %37 = arith.addf %36, %4 : vector<8x1xf32>
    %c0_16 = arith.constant 0 : index
    %c0_17 = arith.constant 0 : index
    %38 = vector.load %arg4[%c0_16, %c0_17] : memref<8x4xf32, #tpu.memory_space<vmem>>, vector<8x1xf32>
    tpu.vector_store %arg4[%c0_16, %c0_17], %37 {strides = array<i32>} : memref<8x4xf32, #tpu.memory_space<vmem>>, vector<8x1xf32>,
    %c0_18 = arith.constant 0 : index
    %c1 = arith.constant 1 : index
    %39 = vector.load %arg4[%c0_18, %c1] : memref<8x4xf32, #tpu.memory_space<vmem>>, vector<8x1xf32>
    %40 = arith.addf %39, %6 : vector<8x1xf32>
    %c0_19 = arith.constant 0 : index
    %c1_20 = arith.constant 1 : index
    %41 = vector.load %arg4[%c0_19, %c1_20] : memref<8x4xf32, #tpu.memory_space<vmem>>, vector<8x1xf32>
    tpu.vector_store %arg4[%c0_19, %c1_20], %40 {strides = array<i32>} : memref<8x4xf32, #tpu.memory_space<vmem>>, vector<8x1xf32>,
    %c0_21 = arith.constant 0 : index
    %c2 = arith.constant 2 : index
    %42 = vector.load %arg4[%c0_21, %c2] : memref<8x4xf32, #tpu.memory_space<vmem>>, vector<8x1xf32>
    %43 = arith.addf %42, %8 : vector<8x1xf32>
    %c0_22 = arith.constant 0 : index
    %c2_23 = arith.constant 2 : index
    %44 = vector.load %arg4[%c0_22, %c2_23] : memref<8x4xf32, #tpu.memory_space<vmem>>, vector<8x1xf32>
    tpu.vector_store %arg4[%c0_22, %c2_23], %43 {strides = array<i32>} : memref<8x4xf32, #tpu.memory_space<vmem>>, vector<8x1xf32>,
    %c0_24 = arith.constant 0 : index
    %c3 = arith.constant 3 : index
    %45 = vector.load %arg4[%c0_24, %c3] : memref<8x4xf32, #tpu.memory_space<vmem>>, vector<8x1xf32>
    %46 = arith.addf %45, %32 : vector<8x1xf32>
    %c0_25 = arith.constant 0 : index
    %c3_26 = arith.constant 3 : index
    %47 = vector.load %arg4[%c0_25, %c3_26] : memref<8x4xf32, #tpu.memory_space<vmem>>, vector<8x1xf32>
    tpu.vector_store %arg4[%c0_25, %c3_26], %46 {strides = array<i32>} : memref<8x4xf32, #tpu.memory_space<vmem>>, vector<8x1xf32>,
    return
  }
  func.func @transform_0(%arg0: i32, %arg1: i32) -> (i32, i32) {
    %c0_i32 = arith.constant 0 : i32
    return %arg0, %arg1 : i32, i32
  }
  func.func @transform_1(%arg0: i32, %arg1: i32) -> (i32, i32) {
    %c0_i32 = arith.constant 0 : i32
    return %arg0, %arg1 : i32, i32
  }
  func.func @transform_2(%arg0: i32, %arg1: i32) -> (i32, i32) {
    %c0_i32 = arith.constant 0 : i32
    %c0_i32_0 = arith.constant 0 : i32
    return %arg0, %c0_i32 : i32, i32
  }
}

</mosaic_0001>

<bundles_post_ra>
// kernel: tpu_custom_call.1
= control target key start
LH: loop header
LB: loop body
LE: loop exit
PB: predicated region body
PF: predicated region fallthrough
CT: control target
= control target key end

     0   :  { %7 = vsyncpa [#allocation3], 0  ;;  %s227_s0 = inlined_call_operand.hbm [shape: f32[8,256], index: 0, kind: input, shape index: {}]   ;;  %s228_s1 = inlined_call_operand.hbm [shape: f32[8,256], index: 1, kind: input, shape index: {}]   ;;  %s229_s2 = inlined_call_operand.vmem [shape: f32[8,4], index: 2, kind: output, shape index: {}]  }
   0x1   :  { %8 = vsyncpa [#allocation5], 0  ;;  %s176_s9 = smov [#allocation2]   ;;  %s177_s11 = smov [#allocation4]  }
   0x2   :  { %s15_s10 = sshll.u32 %s176_s9, 4  ;;  %s25_s12 = sshll.u32 %s177_s11, 4  ;;  %s16_s10 = int_to_ptr.vmem [resolvable:$true] %s15_s10  ;;  %s26_s12 = int_to_ptr.vmem [resolvable:$true] %s25_s12 }
   0x3   :  { %s140_s13 = scalar_lea.vmem %s16_s10, 256  ;;  %p145_p1 = scmp.lt.s32.totalorder %s16_s10, %s16_s10 }
   0x4   :  { %p141_p0 = scmp.ne.s32.totalorder %s16_s10, %s140_s13  ;;  %p146_p2 = scmp.lt.s32.totalorder %s140_s13, %s140_s13 }
   0x6   :  { %p147_p3 = por %p146_p2, %p145_p1 }
   0x8   :  { %p148_p4 = pnand %p147_p3, %p141_p0 }
   0xa   :  { %151 = shalt.err (!%p148_p4)
}
   0xb   :  { %18 = dma.hbm_to_vmem [thread:$0]  %s227_s0, 256, %s16_s10, [#allocation3]  }
   0xc   :  { %s160_s16 = scalar_lea.vmem %s26_s12, 256  ;;  %p165_p6 = scmp.lt.s32.totalorder %s26_s12, %s26_s12 }
   0xd   :  { %p161_p5 = scmp.ne.s32.totalorder %s26_s12, %s160_s16  ;;  %p166_p7 = scmp.lt.s32.totalorder %s160_s16, %s160_s16 }
   0xf   :  { %p167_p8 = por %p166_p7, %p165_p6 }
  0x11   :  { %p168_p9 = pnand %p167_p8, %p161_p5 }
  0x13   :  { %171 = shalt.err (!%p168_p9)
}
  0x14   :  { %28 = dma.hbm_to_vmem [thread:$0]  %s228_s1, 256, %s26_s12, [#allocation5]  }
  0x15   :  { %172 = dma.done.wait [#allocation3], 256  }
  0x16   :  { %173 = vsyncadd [#allocation3], 4294967040 }
  0x17   :  { %174 = dma.done.wait [#allocation5], 256  }
  0x18   :  { %175 = vsyncadd [#allocation5], 4294967040  ;;  %vm93_vm0 = vcmask 31744   ;;  %v178_v0 = vmov 0.0   ;;  %v35_v1 = vld [vmem:[#allocation2] sm:$0xff]  ;;  %v36_v2 = vld [vmem:[#allocation2 + $0x8] sm:$0xff] }
  0x19   :  { %94 = vst.msk [vmem:[%s229_s2] sm:$0xff] %vm93_vm0, %v178_v0  ;;  %v37_v3 = vld [vmem:[#allocation4] sm:$0xff]  ;;  %v38_v4 = vld [vmem:[#allocation4 + $0x8] sm:$0xff]  ;;  %120 = vlog2.f32 %v35_v1  ;;  %v56_v6 = vsub.f32 1.0, %v35_v1  ;;  %v57_v7 = vsub.f32 1.0, %v36_v2  ;;  %v44_v11 = vadd.f32 %v36_v2, %v35_v1 }
  0x1a   :  { %v39_v5 = vmul.f32 %v37_v3, %v35_v1  ;;  %v40_v8 = vmul.f32 %v38_v4, %v36_v2  ;;  %122 = vlog2.f32 %v36_v2  ;;  %v47_v9 = vadd.f32 %v38_v4, %v37_v3 }
  0x1b   :  { %124 = vlog2.f32 %v56_v6  ;;  %v66_v20 = vsub.f32 1.0, %v37_v3  ;;  %v67_v23 = vsub.f32 1.0, %v38_v4  ;;  %vm97_vm1 = vcmask 7168  }
  0x1c   :  { %v41_v10 = vadd.f32 %v40_v8, %v39_v5  ;;  %126 = vlog2.f32 %v57_v7  ;;  %48 = vadd.xlane.f32.xlu1 %v47_v9  ;;  %vm101_vm2 = vcmask 15368   ;;  %vm105_vm3 = vcmask 23568  }
  0x1d   :  { %vm109_vm4 = vcmask 31768  }
  0x1e   :  { %42 = vadd.xlane.f32.xlu0 %v41_v10 }
  0x20   :  { %v95_v47 = vld [vmem:[%s229_s2] sm:$0xff] }
  0x22   :  { %45 = vadd.xlane.f32.xlu0 %v44_v11 }
  0x26   :  { %v121_v12 = vpop.eup %120 }
  0x27   :  { %v123_v13 = vpop.eup %122  ;;  %v51_v14 = vmul.f32 0.6931472, %v121_v12 }
  0x28   :  { %v125_v15 = vpop.eup %124  ;;  %v53_v16 = vmul.f32 0.6931472, %v123_v13 }
  0x29   :  { %v127_v17 = vpop.eup %126  ;;  %v54_v18 = vmax.f32 %v51_v14, -100.0  ;;  %v59_v19 = vmul.f32 0.6931472, %v125_v15 }
  0x2a   :  { %v55_v21 = vmax.f32 %v53_v16, -100.0  ;;  %v61_v22 = vmul.f32 0.6931472, %v127_v17 }
  0x2b   :  { %v62_v24 = vmax.f32 %v59_v19, -100.0  ;;  %v64_v25 = vmul.f32 %v54_v18, %v37_v3 }
  0x2c   :  { %v63_v26 = vmax.f32 %v61_v22, -100.0  ;;  %v65_v27 = vmul.f32 %v55_v21, %v38_v4 }
  0x2d   :  { %v68_v28 = vmul.f32 %v66_v20, %v62_v24 }
  0x2e   :  { %v69_v29 = vmul.f32 %v67_v23, %v63_v26 }
  0x2f   :  { %v70_v30 = vadd.f32 %v68_v28, %v64_v25 }
  0x30   :  { %v71_v31 = vadd.f32 %v69_v29, %v65_v27 }
  0x31   :  { %v72_v32 = vsub.f32 0.0, %v70_v30 }
  0x32   :  { %v73_v33 = vsub.f32 0.0, %v71_v31 }
  0x33   :  { %v74_v34 = vsub.f32 0.0, %v72_v32 }
  0x34   :  { %v75_v35 = vsub.f32 0.0, %v73_v33 }
  0x35   :  { %v76_v36 = vmul.f32 1.442695, %v74_v34 }
  0x36   :  { %v78_v37 = vmul.f32 1.442695, %v75_v35 }
  0x37   :  { %128 = vpow2.f32 %v76_v36 }
  0x38   :  { %130 = vpow2.f32 %v78_v37 }
  0x44   :  { %v129_v38 = vpop.eup %128 }
  0x45   :  { %v131_v39 = vpop.eup %130  ;;  %v80_v40 = vsub.f32 1.0, %v129_v38 }
  0x46   :  { %v81_v41 = vsub.f32 1.0, %v131_v39 }
  0x47   :  { %v82_v42 = vmul.f32 %v80_v40, %v80_v40 }
  0x48   :  { %v83_v43 = vmul.f32 %v81_v41, %v81_v41 }
  0x49   :  { %v84_v44 = vmul.f32 %v82_v42, %v72_v32 }
  0x4a   :  { %v85_v45 = vmul.f32 %v83_v43, %v73_v33 }
  0x4c   :  { %v86_v46 = vadd.f32 %v85_v45, %v84_v44 }
  0x4e   :  { %87 = vadd.xlane.f32.xlu1 %v86_v46 }
  0xa5   :  { %v49_v53 = vpop.xlane.xlu1 %48 }
  0xa7   :  { %v43_v48 = vpop.xlane.xlu0 %42 }
  0xa8   :  { %v96_v49 = vadd.f32 %v95_v47, %v43_v48 }
  0xaa   :  { %98 = vst.msk [vmem:[%s229_s2] sm:$0xff] %vm97_vm1, %v96_v49 }
  0xab   :  { %v46_v50 = vpop.xlane.xlu0 %45 }
  0xb1   :  { %v99_v51 = vld [vmem:[%s229_s2] sm:$0xff] }
  0xb2   :  { %v100_v52 = vadd.f32 %v99_v51, %v46_v50 }
  0xb4   :  { %102 = vst.msk [vmem:[%s229_s2] sm:$0xff] %vm101_vm2, %v100_v52 }
  0xbb   :  { %v103_v54 = vld [vmem:[%s229_s2] sm:$0xff] }
  0xbc   :  { %v104_v55 = vadd.f32 %v103_v54, %v49_v53 }
  0xbe   :  { %106 = vst.msk [vmem:[%s229_s2] sm:$0xff] %vm105_vm3, %v104_v55 }
  0xc5   :  { %v107_v56 = vld [vmem:[%s229_s2] sm:$0xff] }
  0xd7   :  { %v88_v57 = vpop.xlane.xlu1 %87 }
  0xd8   :  { %v108_v58 = vadd.f32 %v107_v56, %v88_v57 }
  0xda   :  { %110 = vst.msk [vmem:[%s229_s2] sm:$0xff] %vm109_vm4, %v108_v58 }
  0xdb   :  { %115 = vsyncpa [#allocation3], 1 }
  0xdc   :  { %116 = vsyncpa [#allocation5], 1 }

</bundles_post_ra>
